<compile_context>
chip_gen: v7x
topology: tpu7x:2x2x1
jax: 0.10.0
libtpu: 0.0.40
codegen_flags: <defaults>
</compile_context>

<pallas_src>
import jax
import jax.numpy as jnp
from jax import lax
from jax.experimental import pallas as pl
from jax.experimental.pallas import tpu as pltpu


def _round_up(a, m):
    return ((a + m - 1) // m) * m


def _make_resblock_kernel(stride, L, TLo, identity_sc):
    """Fused ResBlock kernel for static (stride, true length L, lane tile, shortcut)."""
    TL = stride * TLo                      # input columns consumed per output tile

    def _roll(v, shift):
        # jnp.roll semantics: result[..., i] = v[..., i - shift]
        return pltpu.roll(v, shift % v.shape[-1], 1)

    def kernel(x_ref, xh_ref, w1s_ref, b1_ref, w2s_ref, bo_ref, out_ref):
        cdt = w1s_ref.dtype
        t = pl.program_id(1)
        base = t * TL                       # global x column where this tile starts

        # ---- inputs ----
        if stride == 1:
            xph = [x_ref[0]]                            # (Ci, TLo)
        else:
            xph = [x_ref[p, 0] for p in range(stride)]  # polyphase x

        xh = xh_ref[0, t]                   # (Ci, 4): x[base-2], x[base-1], x[base+TL], x[base+TL+1]
        xl2, xl1 = xh[:, 0:1], xh[:, 1:2]
        xr0, xr1 = xh[:, 2:3], xh[:, 3:4]

        w1s = w1s_ref[...]                              # (Co, 3*Ci) stacked conv1 taps
        b1 = b1_ref[...].astype(jnp.float32)            # (Co, 1)
        bo = bo_ref[...].astype(jnp.float32)            # (Co, 1) bn2 (+ shortcut) bias

        lane = lax.broadcasted_iota(jnp.int32, (1, TLo), 1)
        first = lane == 0
        last = lane == TLo - 1

        # ---- conv1 (+BN1+ReLU), all 3 taps fused into one matmul per phase ----
        def conv1_phase(q):
            """h[:, base + stride*m + q] for m in [0, TLo)."""
            blocks = []
            for k in range(3):
                j = q + k - 1                       # x offset = stride*m + j
                p, d = j % stride, j // stride      # -> x phase p, column shift d
                v = xph[p]
                if d == -1:      # column 0 needs x[base - 1] (left halo)
                    v = jnp.where(first, xl1, _roll(v, 1))
                elif d == 1:     # last column needs x[base + TL] (right halo)
                    v = jnp.where(last, xr0, _roll(v, -1))
                blocks.append(v)
            op = jnp.concatenate(blocks, axis=0)        # (3*Ci, TLo)
            h = jnp.maximum(
                jnp.dot(w1s, op.astype(cdt),
                        preferred_element_type=jnp.float32) + b1, 0.0)
            # h must be exactly zero beyond the true length L so conv2's implicit
            # zero padding is honored on the padded domain.
            pos = base + stride * lane + q
            return jnp.where(pos < L, h, 0.0).astype(cdt)

        q0 = (stride - 1) % stride         # h phase feeding conv2 tap k=0 (shift +1)
        q2 = 1 % stride                    # h phase feeding conv2 tap k=2
        hs = {0: conv1_phase(0)}
        for q in (q2, q0):
            if q not in hs:
                hs[q] = conv1_phase(q)

        # ---- tile-boundary h columns: one small fused matmul ----
        left_op = jnp.concatenate([xl2, xl1, xph[0][:, 0:1]], axis=0)   # (3*Ci, 1)
        if stride == 1:
            right_op = jnp.concatenate([xph[0][:, TLo - 1:TLo], xr0, xr1], axis=0)
            bnd_op = jnp.concatenate([left_op, right_op], axis=1)       # (3*Ci, 2)
        else:
            bnd_op = left_op
        hb = jnp.maximum(
            jnp.dot(w1s, bnd_op.astype(cdt),
                    preferred_element_type=jnp.float32) + b1, 0.0)
        vleft = jnp.logical_and(base - 1 >= 0, base - 1 < L).astype(jnp.float32)
        h_left = (hb[:, 0:1] * vleft).astype(cdt)                       # h[base-1]
        if stride == 1:
            vright = (base + TL < L).astype(jnp.float32)
            h_right = (hb[:, 1:2] * vright).astype(cdt)                 # h[base+TL]

        # ---- conv2 (+folded BN2) + shortcut: one stacked matmul ----
        blk0 = jnp.where(first, h_left, _roll(hs[q0], 1))   # h[s*m - 1]
        blk1 = hs[0]                                         # h[s*m]
        if stride == 1:
            blk2 = jnp.where(last, h_right, _roll(hs[0], -1))
        else:
            blk2 = hs[q2]                                    # h[s*m + 1]
        blocks = [blk0, blk1, blk2]
        if not identity_sc:
            blocks.append(xph[0])                            # 1x1-conv shortcut rows
        op2 = jnp.concatenate(blocks, axis=0).astype(cdt)    # (3*Co [+Ci], TLo)
        y = jnp.dot(w2s_ref[...], op2, preferred_element_type=jnp.float32) + bo
        if identity_sc:
            y = y + xph[0].astype(jnp.float32)
        out_ref[0] = jnp.maximum(y, 0.0).astype(out_ref.dtype)

    return kernel


def resblock_forward(x, W1, bc1, g1, be1, m1, v1,
                     W2, bc2, g2, be2, m2, v2, Wsc=None, bsc=None,
                     *, stride=1, eps=1e-5, lane_tile=1024):
    """Fused ResBlock forward. x: (B, C_in, L) -> (B, C_out, L_out)."""
    B, C_in, L = x.shape
    C_out = W1.shape[0]
    identity_sc = Wsc is None
    if identity_sc:
        assert C_in == C_out and stride == 1
    dt = x.dtype

    # ---- fold conv biases + eval-mode BN into conv weights / per-stage biases ----
    s1 = g1 / jnp.sqrt(v1 + eps)
    w1f = W1 * s1[:, None, None]                       # (C_out, C_in, 3)
    b1f = s1 * (bc1 - m1) + be1
    s2 = g2 / jnp.sqrt(v2 + eps)
    w2f = W2 * s2[:, None, None]                       # (C_out, C_out, 3)
    b2f = s2 * (bc2 - m2) + be2
    bo = b2f if identity_sc else b2f + bsc             # shortcut bias folded in

    # ---- tiling (lane-dense 128-multiple output tiles, sublane-padded channels) ----
    Ci = _round_up(C_in, 8)
    Co = _round_up(C_out, 8)
    Csc = 0 if identity_sc else Ci
    L_out = (L - 1) // stride + 1
    TLo = max(128, min(_round_up(lane_tile, 128), _round_up(L_out, 128)))
    itemsize = jnp.dtype(dt).itemsize

    def vmem_est(tlo):
        nt = pl.cdiv(L, stride * tlo)
        lane = lambda n: _round_up(max(n, 1), 128)
        blocks = (stride * Ci * tlo                   # x block
                  + nt * Ci * lane(4)                 # halo table (per batch)
                  + Co * lane(3 * Ci)                 # stacked w1
                  + Co * lane(3 * Co + Csc)           # stacked w2 (+shortcut)
                  + 2 * Co * lane(1)                  # biases
                  + Co * tlo)                         # out block
        tmp = 4 * ((3 * Ci + 3 * Co + Csc) * tlo + 4 * Co * tlo)  # f32 temporaries
        return 2 * blocks * itemsize + tmp

    # Re-derive the lane tile so the working set fits a conservative budget
    # (v7x TensorCore has only 64 MiB physical VMEM).
    budget = 32 * 1024 * 1024
    while TLo > 128 and vmem_est(TLo) > budget:
        TLo = max(128, _round_up(TLo // 2, 128))
    vmem_limit = int(min(48 * 1024 * 1024,
                         max(16 * 1024 * 1024, vmem_est(TLo) + (8 << 20))))

    TL = stride * TLo
    L_pad = _round_up(L, TL)
    NT = L_pad // TL
    Lo_pad = NT * TLo

    # ---- stacked / padded weights ----
    def pad2(w, r, c):
        return jnp.pad(w, ((0, r - w.shape[0]), (0, c - w.shape[1])))

    w1s = jnp.concatenate([pad2(w1f[:, :, k], Co, Ci) for k in range(3)],
                          axis=1).astype(dt)                          # (Co, 3*Ci)
    w2_blocks = [pad2(w2f[:, :, k], Co, Co) for k in range(3)]
    if not identity_sc:
        w2_blocks.append(pad2(Wsc[:, :, 0], Co, Ci))
    w2s = jnp.concatenate(w2_blocks, axis=1).astype(dt)               # (Co, 3*Co [+Ci])
    b1p = jnp.pad(b1f, (0, Co - C_out)).reshape(Co, 1).astype(jnp.float32)
    bop = jnp.pad(bo, (0, Co - C_out)).reshape(Co, 1).astype(jnp.float32)

    # ---- inputs: pad once; halo columns are a tiny gather (no full x copies) ----
    x_p = jnp.pad(x, ((0, 0), (0, Ci - C_in), (0, L_pad - L)))        # (B, Ci, L_pad)

    starts = jnp.arange(NT, dtype=jnp.int32) * TL
    hidx = jnp.stack([starts - 2, starts - 1, starts + TL, starts + TL + 1],
                     axis=1)                                          # (NT, 4)
    hvalid = jnp.logical_and(hidx >= 0, hidx < L)
    xh = jnp.take(x_p, jnp.clip(hidx, 0, L_pad - 1).reshape(-1), axis=2)
    xh = xh * hvalid.reshape(-1).astype(dt)[None, None, :]
    xh = xh.reshape(B, Ci, NT, 4).transpose(0, 2, 1, 3)               # (B, NT, Ci, 4)

    if stride == 1:
        x_in = x_p                                                    # no extra copy
        x_spec = pl.BlockSpec((1, Ci, TLo), lambda b, t: (b, 0, t))
    else:
        # polyphase split (one transpose copy): xp[p, b, :, m] = x[b, :, stride*m + p]
        x_in = jnp.moveaxis(x_p.reshape(B, Ci, Lo_pad, stride), -1, 0)
        x_spec = pl.BlockSpec((stride, 1, Ci, TLo), lambda b, t: (0, b, 0, t))

    in_specs = [
        x_spec,
        pl.BlockSpec((1, NT, Ci, 4), lambda b, t: (b, 0, 0, 0)),  # once per batch
        pl.BlockSpec(w1s.shape, lambda b, t: (0, 0)),
        pl.BlockSpec(b1p.shape, lambda b, t: (0, 0)),
        pl.BlockSpec(w2s.shape, lambda b, t: (0, 0)),
        pl.BlockSpec(bop.shape, lambda b, t: (0, 0)),
    ]

    out = pl.pallas_call(
        _make_resblock_kernel(stride, L, TLo, identity_sc),
        out_shape=jax.ShapeDtypeStruct((B, Co, Lo_pad), dt),
        grid_spec=pltpu.PrefetchScalarGridSpec(
            num_scalar_prefetch=0,
            grid=(B, NT),
            in_specs=in_specs,
            out_specs=pl.BlockSpec((1, Co, TLo), lambda b, t: (b, 0, t)),
        ),
        compiler_params=pltpu.CompilerParams(
            dimension_semantics=("parallel", "parallel"),
            vmem_limit_bytes=vmem_limit),
    )(x_in, xh, w1s, b1p, w2s, bop)

    return out[:, :C_out, :L_out]


def resblock_ref(x, W1, bc1, g1, be1, m1, v1, W2, bc2, g2, be2, m2, v2,
                 Wsc, bsc, *, stride, eps):
    """Pure-JAX reference matching the PyTorch forward (eval-mode BN)."""
    dn = ('NCH', 'OIH', 'NCH')

    def bn(h, g, be, m, v):
        return (g[None, :, None] * (h - m[None, :, None])
                / jnp.sqrt(v[None, :, None] + eps) + be[None, :, None])

    h = lax.conv_general_dilated(x, W1, (1,), [(1, 1)], dimension_numbers=dn)
    h = bn(h + bc1[None, :, None], g1, be1, m1, v1)
    h = jnp.maximum(h, 0.0)
    h = lax.conv_general_dilated(h, W2, (stride,), [(1, 1)], dimension_numbers=dn)
    h = bn(h + bc2[None, :, None], g2, be2, m2, v2)
    if Wsc is None:
        sc = x
    else:
        sc = lax.conv_general_dilated(x, Wsc, (stride,), [(0, 0)],
                                      dimension_numbers=dn)
        sc = sc + bsc[None, :, None]
    return jnp.maximum(h + sc, 0.0)


if __name__ == "__main__":
    eps = 1e-5

    def make_case(key, B, C_in, C_out, L, stride):
        proj = (C_out != C_in) or (stride > 1)
        ks = jax.random.split(key, 16)
        W1 = 0.3 * jax.random.normal(ks[0], (C_out, C_in, 3), jnp.float32)
        bc1 = 0.1 * jax.random.normal(ks[1], (C_out,), jnp.float32)
        g1 = 1.0 + 0.1 * jax.random.normal(ks[2], (C_out,), jnp.float32)
        be1 = 0.1 * jax.random.normal(ks[3], (C_out,), jnp.float32)
        m1 = 0.1 * jax.random.normal(ks[4], (C_out,), jnp.float32)
        v1 = jax.random.uniform(ks[5], (C_out,), jnp.float32, 0.5, 1.5)
        W2 = 0.3 * jax.random.normal(ks[6], (C_out, C_out, 3), jnp.float32)
        bc2 = 0.1 * jax.random.normal(ks[7], (C_out,), jnp.float32)
        g2 = 1.0 + 0.1 * jax.random.normal(ks[8], (C_out,), jnp.float32)
        be2 = 0.1 * jax.random.normal(ks[9], (C_out,), jnp.float32)
        m2 = 0.1 * jax.random.normal(ks[10], (C_out,), jnp.float32)
        v2 = jax.random.uniform(ks[11], (C_out,), jnp.float32, 0.5, 1.5)
        if proj:
            Wsc = 0.3 * jax.random.normal(ks[12], (C_out, C_in, 1), jnp.float32)
            bsc = 0.1 * jax.random.normal(ks[13], (C_out,), jnp.float32)
        else:
            Wsc = bsc = None
        x = jax.random.normal(ks[15], (B, C_in, L), jnp.float32)
        return (x, W1, bc1, g1, be1, m1, v1, W2, bc2, g2, be2, m2, v2, Wsc, bsc)

    #            name                 B  Ci  Co    L   s  lane_tile
    cases = [("proj_stride1",         2,  4,  8,  16, 1, 512),
             ("proj_stride2_oddL",    2,  8,  8,  19, 2, 512),
             ("identity_shortcut",    2,  8,  8,  16, 1, 512),
             ("proj_stride1_tiled",   2,  4,  8, 300, 1, 128),
             ("proj_stride2_tiled",   2,  8, 16, 300, 2, 128),
             ("proj_stride3_tiled",   2,  6,  8, 800, 3, 128)]

    keys = jax.random.split(jax.random.PRNGKey(0), len(cases))
    ok = True
    for (name, B, C_in, C_out, L, stride, lt), k in zip(cases, keys):
        x, *params = make_case(k, B, C_in, C_out, L, stride)
        out = jax.block_until_ready(
            resblock_forward(x, *params, stride=stride, eps=eps, lane_tile=lt))
        ref = resblock_ref(x, *params, stride=stride, eps=eps)
        assert out.shape == ref.shape, (name, out.shape, ref.shape)
        if not jnp.allclose(out, ref, rtol=2e-4, atol=2e-4):
            ok = False
            print("MISMATCH in %s: max abs err = %e"
                  % (name, float(jnp.max(jnp.abs(out - ref)))))
    if not ok:
        raise SystemExit(1)
    print("KERNEL_OK")
</pallas_src>

<mosaic_0001>
module attributes {stable_mosaic.version = 11 : i64} {
  func.func @kernel(%arg0: i32, %arg1: i32, %arg2: memref<1x8x128xf32, #tpu.memory_space<vmem>>, %arg3: memref<1x1x8x4xf32, #tpu.memory_space<vmem>>, %arg4: memref<8x24xf32, #tpu.memory_space<vmem>>, %arg5: memref<8x1xf32, #tpu.memory_space<vmem>>, %arg6: memref<8x32xf32, #tpu.memory_space<vmem>>, %arg7: memref<8x1xf32, #tpu.memory_space<vmem>>, %arg8: memref<1x8x128xf32, #tpu.memory_space<vmem>>) attributes {dimension_semantics = [#tpu.dimension_semantics<parallel>, #tpu.dimension_semantics<parallel>], iteration_bounds = array<i64: 2, 1>, scalar_prefetch = 0 : i64, scratch_operands = 0 : i64, tpu.core_type = #tpu.core_type<tc>, window_params = [{transform_indices = @transform_0, window_bounds = array<i64: 1, 8, 128>}, {transform_indices = @transform_1, window_bounds = array<i64: 1, 1, 8, 4>}, {pipeline_mode = #tpu.pipeline_mode<synchronous>, transform_indices = @transform_2, window_bounds = array<i64: 8, 24>}, {pipeline_mode = #tpu.pipeline_mode<synchronous>, transform_indices = @transform_3, window_bounds = array<i64: 8, 1>}, {pipeline_mode = #tpu.pipeline_mode<synchronous>, transform_indices = @transform_4, window_bounds = array<i64: 8, 32>}, {pipeline_mode = #tpu.pipeline_mode<synchronous>, transform_indices = @transform_5, window_bounds = array<i64: 8, 1>}, {transform_indices = @transform_6, window_bounds = array<i64: 1, 8, 128>}]} {
    %c128_i32 = arith.constant 128 : i32
    %0 = arith.muli %arg1, %c128_i32 : i32
    %c0 = arith.constant 0 : index
    %c0_0 = arith.constant 0 : index
    %c0_1 = arith.constant 0 : index
    %1 = vector.load %arg2[%c0, %c0_0, %c0_1] : memref<1x8x128xf32, #tpu.memory_space<vmem>>, vector<1x8x128xf32>
    %2 = vector.shape_cast %1 : vector<1x8x128xf32> to vector<8x128xf32>
    %c0_2 = arith.constant 0 : index
    %3 = arith.index_cast %arg1 : i32 to index
    %c0_3 = arith.constant 0 : index
    %c0_4 = arith.constant 0 : index
    %4 = vector.load %arg3[%c0_2, %3, %c0_3, %c0_4] : memref<1x1x8x4xf32, #tpu.memory_space<vmem>>, vector<1x1x8x4xf32>
    %5 = vector.shape_cast %4 : vector<1x1x8x4xf32> to vector<8x4xf32>
    %6 = vector.extract_strided_slice %5 {offsets = [0, 0], sizes = [8, 1], strides = [1, 1]} : vector<8x4xf32> to vector<8x1xf32>
    %7 = vector.extract_strided_slice %5 {offsets = [0, 1], sizes = [8, 1], strides = [1, 1]} : vector<8x4xf32> to vector<8x1xf32>
    %8 = vector.extract_strided_slice %5 {offsets = [0, 2], sizes = [8, 1], strides = [1, 1]} : vector<8x4xf32> to vector<8x1xf32>
    %9 = vector.extract_strided_slice %5 {offsets = [0, 3], sizes = [8, 1], strides = [1, 1]} : vector<8x4xf32> to vector<8x1xf32>
    %c0_5 = arith.constant 0 : index
    %c0_6 = arith.constant 0 : index
    %10 = vector.load %arg4[%c0_5, %c0_6] : memref<8x24xf32, #tpu.memory_space<vmem>>, vector<8x24xf32>
    %c0_7 = arith.constant 0 : index
    %c0_8 = arith.constant 0 : index
    %11 = vector.load %arg5[%c0_7, %c0_8] : memref<8x1xf32, #tpu.memory_space<vmem>>, vector<8x1xf32>
    %c0_9 = arith.constant 0 : index
    %c0_10 = arith.constant 0 : index
    %12 = vector.load %arg7[%c0_9, %c0_10] : memref<8x1xf32, #tpu.memory_space<vmem>>, vector<8x1xf32>
    %13 = tpu.iota {dimensions = array<i32: 1>} : vector<1x128xi32>
    %c0_i32 = arith.constant 0 : i32
    %14 = vector.broadcast %c0_i32 : i32 to vector<1x128xi32>
    %15 = arith.cmpi eq, %13, %14 : vector<1x128xi32>
    %c127_i32 = arith.constant 127 : i32
    %16 = vector.broadcast %c127_i32 : i32 to vector<1x128xi32>
    %17 = arith.cmpi eq, %13, %16 : vector<1x128xi32>
    %c1_i32 = arith.constant 1 : i32
    %18 = tpu.dynamic_rotate %2 by %c1_i32 dim 1 : vector<8x128xf32>, i32 -> vector<8x128xf32>
    %19 = vector.shape_cast %15 : vector<1x128xi1> to vector<1x128xi1>
    %20 = vector.broadcast %19 : vector<1x128xi1> to vector<8x128xi1>
    %21 = vector.shape_cast %7 : vector<8x1xf32> to vector<8x1xf32>
    %22 = vector.broadcast %21 : vector<8x1xf32> to vector<8x128xf32>
    %23 = arith.select %20, %22, %18 : vector<8x128xi1>, vector<8x128xf32>
    %c127_i32_11 = arith.constant 127 : i32
    %24 = tpu.dynamic_rotate %2 by %c127_i32_11 dim 1 : vector<8x128xf32>, i32 -> vector<8x128xf32>
    %25 = vector.shape_cast %17 : vector<1x128xi1> to vector<1x128xi1>
    %26 = vector.broadcast %25 : vector<1x128xi1> to vector<8x128xi1>
    %27 = vector.shape_cast %8 : vector<8x1xf32> to vector<8x1xf32>
    %28 = vector.broadcast %27 : vector<8x1xf32> to vector<8x128xf32>
    %29 = arith.select %26, %28, %24 : vector<8x128xi1>, vector<8x128xf32>
    %30 = tpu.concatenate %23, %2, %29 in 0 : vector<8x128xf32>, vector<8x128xf32>, vector<8x128xf32> -> vector<24x128xf32>
    %cst = arith.constant dense<0.000000e+00> : vector<8x128xf32>
    %31 = tpu.matmul %10, %30, %cst {dimension_numbers = #tpu.dot_dimension_numbers<[1], [0], [0], [1], [0, 0, 1, 1], [], []>} : vector<8x24xf32>, vector<24x128xf32>, vector<8x128xf32> -> vector<8x128xf32>
    %32 = vector.broadcast %11 : vector<8x1xf32> to vector<8x128xf32>
    %33 = arith.addf %31, %32 : vector<8x128xf32>
    %cst_12 = arith.constant 0.000000e+00 : f32
    %34 = vector.broadcast %cst_12 : f32 to vector<8x128xf32>
    %35 = arith.maximumf %33, %34 : vector<8x128xf32>
    %c1_i32_13 = arith.constant 1 : i32
    %36 = vector.broadcast %c1_i32_13 : i32 to vector<1x128xi32>
    %37 = arith.muli %36, %13 : vector<1x128xi32>
    %38 = vector.broadcast %0 : i32 to vector<1x128xi32>
    %39 = arith.addi %38, %37 : vector<1x128xi32>
    %c0_i32_14 = arith.constant 0 : i32
    %40 = vector.broadcast %c0_i32_14 : i32 to vector<1x128xi32>
    %41 = arith.addi %39, %40 : vector<1x128xi32>
    %c16_i32 = arith.constant 16 : i32
    %42 = vector.broadcast %c16_i32 : i32 to vector<1x128xi32>
    %43 = arith.cmpi slt, %41, %42 : vector<1x128xi32>
    %cst_15 = arith.constant 0.000000e+00 : f32
    %44 = vector.shape_cast %43 : vector<1x128xi1> to vector<1x128xi1>
    %45 = vector.broadcast %44 : vector<1x128xi1> to vector<8x128xi1>
    %46 = vector.broadcast %cst_15 : f32 to vector<8x128xf32>
    %47 = arith.select %45, %35, %46 : vector<8x128xi1>, vector<8x128xf32>
    %48 = vector.extract_strided_slice %2 {offsets = [0, 0], sizes = [8, 1], strides = [1, 1]} : vector<8x128xf32> to vector<8x1xf32>
    %49 = tpu.concatenate %6, %7, %48 in 0 : vector<8x1xf32>, vector<8x1xf32>, vector<8x1xf32> -> vector<24x1xf32>
    %50 = vector.extract_strided_slice %2 {offsets = [0, 127], sizes = [8, 1], strides = [1, 1]} : vector<8x128xf32> to vector<8x1xf32>
    %51 = tpu.concatenate %50, %8, %9 in 0 : vector<8x1xf32>, vector<8x1xf32>, vector<8x1xf32> -> vector<24x1xf32>
    %52 = tpu.concatenate %49, %51 in 1 : vector<24x1xf32>, vector<24x1xf32> -> vector<24x2xf32>
    %cst_16 = arith.constant dense<0.000000e+00> : vector<8x2xf32>
    %53 = tpu.matmul %10, %52, %cst_16 {dimension_numbers = #tpu.dot_dimension_numbers<[1], [0], [0], [1], [0, 0, 1, 1], [], []>} : vector<8x24xf32>, vector<24x2xf32>, vector<8x2xf32> -> vector<8x2xf32>
    %54 = vector.broadcast %11 : vector<8x1xf32> to vector<8x2xf32>
    %55 = arith.addf %53, %54 : vector<8x2xf32>
    %cst_17 = arith.constant 0.000000e+00 : f32
    %56 = vector.broadcast %cst_17 : f32 to vector<8x2xf32>
    %57 = arith.maximumf %55, %56 : vector<8x2xf32>
    %c1_i32_18 = arith.constant 1 : i32
    %58 = arith.subi %0, %c1_i32_18 : i32
    %c0_i32_19 = arith.constant 0 : i32
    %59 = arith.cmpi sge, %58, %c0_i32_19 : i32
    %c1_i32_20 = arith.constant 1 : i32
    %60 = arith.subi %0, %c1_i32_20 : i32
    %c16_i32_21 = arith.constant 16 : i32
    %61 = arith.cmpi slt, %60, %c16_i32_21 : i32
    %62 = arith.andi %59, %61 : i1
    %63 = arith.extui %62 : i1 to i32
    %64 = arith.sitofp %63 : i32 to f32
    %65 = vector.extract_strided_slice %57 {offsets = [0, 0], sizes = [8, 1], strides = [1, 1]} : vector<8x2xf32> to vector<8x1xf32>
    %66 = vector.broadcast %64 : f32 to vector<8x1xf32>
    %67 = arith.mulf %65, %66 : vector<8x1xf32>
    %c128_i32_22 = arith.constant 128 : i32
    %68 = arith.addi %0, %c128_i32_22 : i32
    %c16_i32_23 = arith.constant 16 : i32
    %69 = arith.cmpi slt, %68, %c16_i32_23 : i32
    %70 = arith.extui %69 : i1 to i32
    %71 = arith.sitofp %70 : i32 to f32
    %72 = vector.extract_strided_slice %57 {offsets = [0, 1], sizes = [8, 1], strides = [1, 1]} : vector<8x2xf32> to vector<8x1xf32>
    %73 = vector.broadcast %71 : f32 to vector<8x1xf32>
    %74 = arith.mulf %72, %73 : vector<8x1xf32>
    %c1_i32_24 = arith.constant 1 : i32
    %75 = tpu.dynamic_rotate %47 by %c1_i32_24 dim 1 : vector<8x128xf32>, i32 -> vector<8x128xf32>
    %76 = vector.shape_cast %15 : vector<1x128xi1> to vector<1x128xi1>
    %77 = vector.broadcast %76 : vector<1x128xi1> to vector<8x128xi1>
    %78 = vector.shape_cast %67 : vector<8x1xf32> to vector<8x1xf32>
    %79 = vector.broadcast %78 : vector<8x1xf32> to vector<8x128xf32>
    %80 = arith.select %77, %79, %75 : vector<8x128xi1>, vector<8x128xf32>
    %c127_i32_25 = arith.constant 127 : i32
    %81 = tpu.dynamic_rotate %47 by %c127_i32_25 dim 1 : vector<8x128xf32>, i32 -> vector<8x128xf32>
    %82 = vector.shape_cast %17 : vector<1x128xi1> to vector<1x128xi1>
    %83 = vector.broadcast %82 : vector<1x128xi1> to vector<8x128xi1>
    %84 = vector.shape_cast %74 : vector<8x1xf32> to vector<8x1xf32>
    %85 = vector.broadcast %84 : vector<8x1xf32> to vector<8x128xf32>
    %86 = arith.select %83, %85, %81 : vector<8x128xi1>, vector<8x128xf32>
    %87 = tpu.concatenate %80, %47, %86, %2 in 0 : vector<8x128xf32>, vector<8x128xf32>, vector<8x128xf32>, vector<8x128xf32> -> vector<32x128xf32>
    %c0_26 = arith.constant 0 : index
    %c0_27 = arith.constant 0 : index
    %88 = vector.load %arg6[%c0_26, %c0_27] : memref<8x32xf32, #tpu.memory_space<vmem>>, vector<8x32xf32>
    %cst_28 = arith.constant dense<0.000000e+00> : vector<8x128xf32>
    %89 = tpu.matmul %88, %87, %cst_28 {dimension_numbers = #tpu.dot_dimension_numbers<[1], [0], [0], [1], [0, 0, 1, 1], [], []>} : vector<8x32xf32>, vector<32x128xf32>, vector<8x128xf32> -> vector<8x128xf32>
    %90 = vector.broadcast %12 : vector<8x1xf32> to vector<8x128xf32>
    %91 = arith.addf %89, %90 : vector<8x128xf32>
    %cst_29 = arith.constant 0.000000e+00 : f32
    %92 = vector.broadcast %cst_29 : f32 to vector<8x128xf32>
    %93 = arith.maximumf %91, %92 : vector<8x128xf32>
    %c0_30 = arith.constant 0 : index
    %c0_31 = arith.constant 0 : index
    %c0_32 = arith.constant 0 : index
    %94 = vector.load %arg8[%c0_30, %c0_31, %c0_32] : memref<1x8x128xf32, #tpu.memory_space<vmem>>, vector<1x8x128xf32>
    %95 = vector.shape_cast %94 : vector<1x8x128xf32> to vector<8x128xf32>
    %96 = vector.shape_cast %93 : vector<8x128xf32> to vector<1x8x128xf32>
    tpu.vector_store %arg8[%c0_30, %c0_31, %c0_32], %96 {strides = array<i32>} : memref<1x8x128xf32, #tpu.memory_space<vmem>>, vector<1x8x128xf32>,
    return
  }
  func.func @transform_0(%arg0: i32, %arg1: i32) -> (i32, i32, i32) {
    %c0_i32 = arith.constant 0 : i32
    %c0_i32_0 = arith.constant 0 : i32
    return %arg0, %c0_i32, %arg1 : i32, i32, i32
  }
  func.func @transform_1(%arg0: i32, %arg1: i32) -> (i32, i32, i32, i32) {
    %c0_i32 = arith.constant 0 : i32
    %c0_i32_0 = arith.constant 0 : i32
    %c0_i32_1 = arith.constant 0 : i32
    %c0_i32_2 = arith.constant 0 : i32
    return %arg0, %c0_i32, %c0_i32_0, %c0_i32_1 : i32, i32, i32, i32
  }
  func.func @transform_2(%arg0: i32, %arg1: i32) -> (i32, i32) {
    %c0_i32 = arith.constant 0 : i32
    %c0_i32_0 = arith.constant 0 : i32
    %c0_i32_1 = arith.constant 0 : i32
    return %c0_i32, %c0_i32_0 : i32, i32
  }
  func.func @transform_3(%arg0: i32, %arg1: i32) -> (i32, i32) {
    %c0_i32 = arith.constant 0 : i32
    %c0_i32_0 = arith.constant 0 : i32
    %c0_i32_1 = arith.constant 0 : i32
    return %c0_i32, %c0_i32_0 : i32, i32
  }
  func.func @transform_4(%arg0: i32, %arg1: i32) -> (i32, i32) {
    %c0_i32 = arith.constant 0 : i32
    %c0_i32_0 = arith.constant 0 : i32
    %c0_i32_1 = arith.constant 0 : i32
    return %c0_i32, %c0_i32_0 : i32, i32
  }
  func.func @transform_5(%arg0: i32, %arg1: i32) -> (i32, i32) {
    %c0_i32 = arith.constant 0 : i32
    %c0_i32_0 = arith.constant 0 : i32
    %c0_i32_1 = arith.constant 0 : i32
    return %c0_i32, %c0_i32_0 : i32, i32
  }
  func.func @transform_6(%arg0: i32, %arg1: i32) -> (i32, i32, i32) {
    %c0_i32 = arith.constant 0 : i32
    %c0_i32_0 = arith.constant 0 : i32
    return %arg0, %c0_i32, %arg1 : i32, i32, i32
  }
}

</mosaic_0001>

<bundles_post_ra>
// kernel: tpu_custom_call.1
= control target key start
LH: loop header
LB: loop body
LE: loop exit
PB: predicated region body
PF: predicated region fallthrough
CT: control target
= control target key end

     0   :  { %11 = vsyncpa [#allocation3], 0  ;;  %s1150_s0 = inlined_call_operand.vmem [shape: f32[2,8,128], index: 0, kind: input, shape index: {}]   ;;  %s1151_s1 = inlined_call_operand.vmem [shape: f32[2,1,8,4], index: 1, kind: input, shape index: {}]   ;;  %s1152_s2 = inlined_call_operand.vmem [shape: f32[8,24], index: 2, kind: input, shape index: {}]   ;;  %s1153_s3 = inlined_call_operand.vmem [shape: f32[8,1], index: 3, kind: input, shape index: {}]   ;;  %s1154_s4 = inlined_call_operand.vmem [shape: f32[8,32], index: 4, kind: input, shape index: {}]   ;;  %s1155_s5 = inlined_call_operand.vmem [shape: f32[8,1], index: 5, kind: input, shape index: {}]   ;;  %s1156_s6 = inlined_call_operand.hbm [shape: f32[2,8,128], index: 6, kind: output, shape index: {}]  }
   0x1   :  { %13 = vsyncpa [#allocation3 + $0x1], 0  ;;  %s988_s21 = smov 0   ;;  %s990_s22 = smov 0  }
   0x2   :  { %s992_s23 = smov 0   ;;  %s994_s24 = smov 0  }
   0x3   :  { %s996_s25 = smov 0   ;;  %s998_s26 = smov 0  }
   0x4 LB: > { %s711_s27 = sadd.s32 4294967295, %s938_s26   ;;  %s712_s28 = sadd.s32 4294967294, %s938_s26   ;;  %s938_s26 = sphi %s998_s26, %s19_s26   ;;  %s934_s25 = sphi %s996_s25, %s1163_s25   ;;  %s930_s24 = sphi %s994_s24, %s1162_s24   ;;  %s926_s23 = sphi %s992_s23, %s1161_s23   ;;  %s922_s22 = sphi %s990_s22, %s1160_s22   ;;  %s918_s21 = sphi %s988_s21, %s1159_s21  }
   0x5   : > { %s31_s29 = sadd.s32 1, %s934_s25  ;;  %s178_s30 = sadd.s32 1, %s926_s23 }
   0x6   : > { %p33_p0 = scmp.ge.s32.totalorder %s31_s29, 2  ;;  %p188_p1 = scmp.ne.s32.totalorder %s926_s23, %s922_s22 }
   0x7   : > { %p189_p2 = scmp.eq.s32.totalorder %s711_s27, 1  ;;  %p194_p3 = scmp.ne.s32.totalorder %s922_s22, %s918_s21 }
   0x8   : > { %s1165_s29 = smov (%p33_p0, %s31_s29), 0  ;;  %p195_p5 = scmp.eq.s32.totalorder %s712_s28, 1 }
   0x9   : > { %p1028_p4 = por %p189_p2, %p188_p1  ;;  %s173_s8 = ssub.s32 %s934_s25, %s1165_s29 }
   0xa   : > { %p715_p6 = scmp.ge.s32.totalorder %s938_s26, 1  ;;  %p176_p7 = scmp.eq.s32.totalorder %s173_s8, 0 }
   0xb   : > { %p1035_p8 = por %p195_p5, %p194_p3  ;;  %p242_p9 = scmp.lt.s32.totalorder %s938_s26, 3 }
   0xc   : > { %s1041_s10 = scalar_select %p176_p7, %s926_s23, %s178_s30  }
   0xd   : > { %p243_p10 = pnand %p715_p6, %p242_p9 }
   0xe   : > { %p278_p11 = scmp.lt.s32.totalorder (!%p243_p10), %s930_s24, 1  ;;  %v940_v0 = vmov (!%p243_p10), 1   ;;  %s941_s16 = smov (!%p243_p10), 125   ;;  %v943_v2 = vmov (!%p243_p10), 2   ;;  %v944_v4 = vmov (!%p243_p10), 0.0|0.0   ;;  %vm947_vm0 = vmmov (!%p243_p10), 0  }
   0xf   : > { %246 = sbr.rel (%p243_p10) target bundleno = 859 (0x35b), region = 44  ;;  %849 = vset.pattern.permute.xlu1 (!%p243_p10), %v940_v0  ;;  %s942_s20 = smov (!%p243_p10), 124   ;;  %769 = vmatprep.subr.bf16.mxu1 (!%p243_p10), %v944_v4  ;;  %v948_v5 = vmov (!%p243_p10), 0.0   ;;  %v949_v8 = vmov (!%p243_p10), 0   ;;  %v297_v9 = vlaneseq (!%p243_p10)  ;;  %v295_v11 = vld [vmem:[%s1153_s3] sm:$0xff] (!%p243_p10)  ;;  %vm325_vm3 = vcmask (!%p243_p10), 195584  }
  0x10   : > { %775 = vmatprep.subr.bf16.mxu0 (!%p243_p10), %v944_v4  ;;  %s945_s27 = smov (!%p243_p10), 1   ;;  %s946_s28 = smov (!%p243_p10), 127   ;;  %746 = vmatprep.mubr.msk.f32.mxu1 (!%p243_p10), %vm947_vm0, %v948_v5  ;;  %v294_v19 = vld [vmem:[%s1152_s2] sm:$0xff] (!%p243_p10)  ;;  %vm423_vm4 = vcmask (!%p243_p10), 7168   ;;  %vm951_vm6 = vmmov (!%p243_p10), 1   ;;  %vm535_vm8 = vcmask (!%p243_p10), 261120  }
  0x11   : > { %766 = vmatprep.mubr.msk.f32.mxu0 (!%p243_p10), %vm947_vm0, %v948_v5  ;;  %857 = vset.pattern.permute.xlu0 (!%p243_p10), %v949_v8  ;;  %s950_s30 = smov (!%p243_p10), 2   ;;  %v1066_v12 = vand.u32 (!%p243_p10), 127, %v297_v9  ;;  %v296_v41 = vld [vmem:[%s1155_s5] sm:$0xff] (!%p243_p10)  ;;  %s275_s18 = sand.u32 (!%p243_p10), 1, %s922_s22  }
  0x12   : > { %v529_v50 = vld [vmem:[%s1154_s4] sm:$0xff] (!%p243_p10) }
  0x13   : > { %vm299_vm1 = vcmp.eq.s32.totalorder (!%p243_p10), %v1066_v12, 0  ;;  %vm300_vm2 = vcmp.eq.s32.totalorder (!%p243_p10), %v1066_v12, 127  ;;  %vm402_vm5 = vcmp.lt.s32.totalorder (!%p243_p10), %v1066_v12, 16 }
  0x14   : > { %vm777_vm7 = vmpackc.low (!%p243_p10), %vm402_vm5, %vm951_vm6 }
  0x16   : > { %s279_s11 = scalar_select %p278_p11, %s930_s24, 1 }
  0x18   : > { %s717_s12 = sshll.u32 %s279_s11, 3 }
  0x19   : > { %s288_s15 = scalar_lea.vmem %s1151_s1, %s717_s12  ;;  %s284_s19 = scalar_lea.vmem %s1150_s0, %s717_s12 }
  0x1a   : > { %v293_v1 = vld [vmem:[%s288_s15] sm:$0xff]  ;;  %s612_s12 = scalar_lea.sflag [#allocation3], %s275_s18 }
  0x1b   : > { %409 = vrot.lane.b32.xlu0 %v293_v1, %s941_s16  ;;  %307 = vperm.xlu1 %849, %v293_v1   ;;  %v1051_v3 = vld [vmem:[%s284_s19] sm:$0xff]  ;;  %s716_s19 = sshll.u32 %s275_s18, 3 }
  0x1f   : > { %411 = vrot.lane.b32.xlu0 %v293_v1, %s942_s20  ;;  %850 = vset.pattern.permute.xlu1 %v943_v2  ;;  %s724_s20 = sshll.u32 %s930_s24, 7  ;;  %s952_s24 = smov [#allocation2]  }
  0x20   : > { %316 = vperm.xlu1 %850, %v293_v1   ;;  %s1103_s11 = scalar_lea.hbm %s1156_s6, %s724_s20  ;;  %s864_s14 = sshll.u32 %s952_s24, 4  ;;  %s865_s14 = int_to_ptr.vmem [resolvable:$false] %s864_s14 }
  0x21   : > { %s866_s15 = scalar_lea.vmem %s865_s14, 256 }
  0x23   : > { %301 = vrot.lane.b32.xlu0 %v1051_v3, %s945_s27 }
  0x24   : > { %311 = vrot.lane.b32.xlu1 %v1051_v3, %s946_s28 }
  0x25   : > { %856 = vset.pattern.permute.xlu1 %v949_v8 }
  0x27   : > { %406 = vrot.lane.b32.xlu0 %v293_v1, %s946_s28 }
  0x8d   : > { %v410_v6 = vpop.permute.xlu0 %409 }
  0x8e   : > { %v851_v7 = vpack.i.bf16 %v410_v6, %v1051_v3 }
  0x90   : > { %852 = vrot.lane.b32.xlu1 %v851_v7, %s950_s30 }
  0x91   : > { %v412_v10 = vpop.permute.xlu0 %411 }
  0x92   : > { %418 = vrot.lane.b32.xlu0 %v412_v10, %s950_s30 }
  0x94   : > { %322 = vperm.xlu1 %856, %v295_v11  }
  0x95   : > { %v302_v13 = vpop.permute.xlu0 %301 }
  0x98   : > { %858 = vset.pattern.permute.xlu1 %v940_v0 }
  0x99   : > { %v407_v22 = vpop.permute.xlu0 %406 }
  0x9a   : > { %v308_v14 = vpop.permute.xlu1 %307 }
  0x9b   : > { %v310_v15 = vsel %vm299_vm1, %v308_v14, %v302_v13 }
  0x9c   : > { %v770_v16 = vpack.c.bf16 %v1051_v3, %v310_v15 }
  0x9e   : > { %771 = vmatpush3.bf16.msra.mxu1 %v770_v16 }
  0x9f   : > { %v317_v17 = vpop.permute.xlu1 %316  ;;  %744 = vmatprep.subr.mxu1 %v948_v5 }
  0xa3   : > { %v312_v18 = vpop.permute.xlu1 %311 }
  0xa4   : > { %v319_v20 = vsel %vm300_vm2, %v317_v17, %v312_v18 }
  0xa5   : > { %745 = vmatpush3.msra.mxu1 %v319_v20 }
  0xa6   : > { %747 = vmatmul.mubr.msk.f32.vlgmr.msra.gmra.mrb[0].mxu1 %vm325_vm3, %v294_v19  ;;  %772 = vmatprep.subr.bf16.mxu1 %v944_v4 }
  0xa7   : > { %755 = vmatprep.mubr.msk.f32.mxu1 %vm947_vm0, %v948_v5 }
 0x102   : > { %v853_v21 = vpop.permute.xlu1 %852 }
 0x103   : > { %v855_v23 = vunpack.i.h.bf16 %v853_v21  ;;  %v854_v24 = vunpack.i.l.bf16 %v853_v21 }
 0x104   : > { %v419_v28 = vpop.permute.xlu0 %418 }
 0x105   : > { %v424_v25 = vsel %vm423_vm4, %v293_v1, %v854_v24  ;;  %v425_v26 = vsel %vm423_vm4, %v407_v22, %v855_v23  ;;  %v426_v29 = vsel %vm423_vm4, %v1051_v3, %v419_v28 }
 0x106   : > { %v773_v27 = vpack.c.bf16 %v425_v26, %v424_v25 }
 0x108   : > { %774 = vmatpush3.bf16.msra.mxu1 %v773_v27 }
 0x109   : > { %753 = vmatprep.subr.mxu1 %v948_v5 }
 0x10c   : > { %754 = vmatpush3.msra.mxu1 %v426_v29 }
 0x10d   : > { %756 = vmatmul.mubr.msk.f32.vlgmr.msra.gmra.mrb[2].mxu1 %vm325_vm3, %v294_v19 }
 0x113   : > { %v323_v32 = vpop.permute.xlu1 %322 }
 0x179   : > { %v395_v30 = vpop.f32.mrb[0].mxu1 }
 0x17a   : > { %v748_v31 = vpop.f32.mrb[1].mxu1  ;;  %v396_v36 = vadd.f32 %v395_v30, %v323_v32 }
 0x17c   : > { %v399_v39 = vmax.f32 %v396_v36, 0.0 }
 0x17e   : > { %v405_v40 = vsel %vm402_vm5, %v399_v39, 0.0 }
 0x1e0   : > { %v493_v33 = vpop.f32.mrb[2].mxu1 }
 0x1e1   : > { %v494_v34 = vadd.f32 %v493_v33, %v323_v32  ;;  %v757_v35 = vpop.f32.mrb[3].mxu1 }
 0x1e3   : > { %v497_v37 = vmax.f32 %v494_v34, 0.0 }
 0x1e5   : > { %v506_v38 = vmul.f32 0.0, %v497_v37 }
 0x1e7   : > { %525 = vperm.xlu1 %858, %v506_v38   ;;  %517 = vperm.xlu0 %857, %v506_v38  }
 0x1eb   : > { %513 = vrot.lane.b32.xlu1 %v405_v40, %s945_s27  ;;  %521 = vrot.lane.b32.xlu0 %v405_v40, %s946_s28  ;;  %s277_s27 = scalar_lea.vmem [#allocation2], %s716_s19 }
 0x1ec   : > { %859 = vset.pattern.permute.xlu1 %v949_v8  ;;  %s626_s28 = sshll.u32 %s277_s27, 4  ;;  %s1105_s28 = int_to_ptr.vmem [resolvable:$true] %s626_s28 }
 0x1ed   : > { %s860_s13 = scalar_lea.vmem %s1105_s28, 128  ;;  %p867_p1 = scmp.lt.s32.totalorder %s1105_s28, %s865_s14 }
 0x1ee   : > { %p861_p12 = scmp.ne.s32.totalorder %s1105_s28, %s860_s13  ;;  %p868_p2 = scmp.lt.s32.totalorder %s866_s15, %s860_s13 }
 0x1ef   : > { %532 = vperm.xlu1 %859, %v296_v41  }
 0x1f0   : > { %p862_p13 = pnand %p861_p12, %p1028_p4  ;;  %p869_p3 = por %p868_p2, %p867_p1 }
 0x1f2   : > { %p863_p0 = pneg %p862_p13 }
 0x1f4   : > { %p870_p5 = pnand %p869_p3, %p863_p0 }
 0x266   : > { %v526_v42 = vpop.permute.xlu1 %525  ;;  %v518_v43 = vpop.permute.xlu0 %517 }
 0x26a   : > { %v514_v44 = vpop.permute.xlu1 %513  ;;  %v522_v45 = vpop.permute.xlu0 %521 }
 0x26b   : > { %v520_v46 = vsel %vm299_vm1, %v518_v43, %v514_v44  ;;  %v528_v48 = vsel %vm300_vm2, %v526_v42, %v522_v45 }
 0x26c   : > { %v776_v47 = vpack.c.bf16 %v399_v39, %v520_v46  ;;  %v780_v49 = vpack.c.bf16 %v1051_v3, %v528_v48 }
 0x26e   : > { %778 = vmatpush3.bf16.msk.msra.mxu0 %vm777_vm7, %v776_v47  ;;  %v533_v51 = vpop.permute.xlu1 %532 }
 0x26f   : > { %779 = vmatprep.subr.bf16.mxu0 %v944_v4 }
 0x272   : > { %781 = vmatpush3.bf16.msra.mxu0 %v780_v49 }
 0x275   : > { %767 = vmatmul.mubr.msk.f32.vlgmr.msra.gmra.mrb[0].mxu0 %vm535_vm8, %v529_v50 }
 0x348   : > { %v605_v52 = vpop.f32.mrb[0].mxu0 }
 0x349   : > { %v606_v53 = vadd.f32 %v605_v52, %v533_v51  ;;  %v768_v54 = vpop.f32.mrb[1].mxu0 }
 0x34b   : > { %v609_v55 = vmax.f32 %v606_v53, 0.0 }
 0x34d   : > { %610 = vst [vmem:[%s277_s27] sm:$0xff] %v609_v55 }
 0x34e   : > { %873 = shalt.err (!%p870_p5)
}
 0x34f   : > { %s874_s16 = scalar_lea.hbm %s1103_s11, 128  ;;  %s878_s19 = scalar_lea.hbm %s1156_s6, 256 }
 0x350   : > { %p875_p6 = scmp.ne.s32.totalorder %s1103_s11, %s874_s16  ;;  %p879_p10 = scmp.lt.u32.totalorder %s1103_s11, %s1156_s6 }
 0x351   : > { %p880_p11 = scmp.lt.u32.totalorder %s878_s19, %s874_s16  ;;  %p882_p13 = scmp.lt.u32.totalorder %s874_s16, %s1103_s11 }
 0x352   : > { %p876_p7 = pnand %p875_p6, %p1028_p4 }
 0x353   : > { %p881_p12 = por %p880_p11, %p879_p10 }
 0x354   : > { %p877_p9 = pneg %p876_p7 }
 0x355   : > { %p883_p0 = por %p882_p13, %p881_p12 }
 0x357   : > { %p884_p1 = pnand %p883_p0, %p877_p9 }
 0x359   : > { %887 = shalt.err (!%p884_p1)
}
 0x35a   : > { %782 = dma.vmem_to_hbm [thread:$0]  (%p1028_p4), %s1105_s28, 128, %s1103_s11, %s612_s12  }
 0x35b PF: > { %p788_p2 = scmp.ge.s32.totalorder %s938_s26, 2  ;;  %s638_s30 = sand.u32 1, %s918_s21  }
 0x35c   : > { %s639_s8 = scalar_lea.sflag [#allocation3], %s638_s30 }
 0x35d   : > { %p785_p3 = pnand %p788_p2, %p1035_p8 }
 0x35f   : > { %913 = dma.done.wait (!%p785_p3), %s639_s8, 128  }
 0x360   : > { %915 = vsyncadd (!%p785_p3), %s639_s8, 4294967168  ;;  %s19_s26 = sadd.s32 1, %s938_s26   ;;  %s1159_s21 = smov %s922_s22 }
 0x361   : > { %p16_p5 = scmp.ge.s32.totalorder %s19_s26, 4   ;;  %s1160_s22 = smov %s926_s23 }
 0x362   : > { %s1161_s23 = smov %s1041_s10  ;;  %s1162_s24 = smov %s934_s25 }
 0x363   : > { %s1163_s25 = smov %s1165_s29  ;;  %18 = sbr.rel (!%p16_p5) target bundleno = 4 (0x4), region = 83 }
 0x36a   :  { %644 = vsyncpa [#allocation3], 1 }
 0x36b   :  { %646 = vsyncpa [#allocation3 + $0x1], 1 }

</bundles_post_ra>
